<compile_context>
chip_gen: v7x
topology: tpu7x:2x2x1
jax: 0.10.0
libtpu: 0.0.40
codegen_flags: <defaults>
</compile_context>

<pallas_src>
import math

import jax
import jax.numpy as jnp
from jax.experimental import pallas as pl
from jax.experimental.pallas import tpu as pltpu

_LANE = 128


def _round_up(n, m):
    return ((n + m - 1) // m) * m


def _mxu_depth():
    """MXU contraction depth: 128 on v2-v5, 256 on v6e/v7x (default 256)."""
    try:
        kind = jax.devices()[0].device_kind.lower()
    except Exception:
        kind = ""
    for old in ("v2", "v3", "v4", "v5"):
        if old in kind:
            return 128
    return 256


def _pick_pack_factor(input_dim):
    """How many batch rows to pack per MXU row (block-diagonal weights)."""
    if input_dim >= _LANE:
        return 1
    return max(1, min(8, _mxu_depth() // input_dim))


def _pick_tile_rows(rows, p, input_dim, h1_dim, h2_dim):
    """Largest packed-row tile whose lane-padded VMEM footprint (double-buffered
    x/out tiles, f32+bf16 intermediates, resident double-buffered weights) fits
    a conservative budget; guarantees >=2 grid steps when the batch is large
    enough so both v7x TensorCores get work."""
    pad_k = _round_up(p * input_dim, _LANE)
    pad_h1 = _round_up(p * h1_dim, _LANE)
    pad_h2 = _round_up(p * h2_dim, _LANE)
    pad_o = _round_up(p, _LANE)
    # VMEM-resident weights / biases (assume double-buffered even if DMA'd once).
    fixed = 2 * (_round_up(p * input_dim, 16) * pad_h1 * 2
                 + _round_up(p * h1_dim, 16) * pad_h2 * 2
                 + _round_up(p * h2_dim, 16) * pad_o * 2
                 + 8 * pad_h1 * 4 + 8 * pad_h2 * 4)
    # Per packed-row bytes: double-buffered bf16 x tile and f32 (lane-padded)
    # output tile, plus f32/bf16 h1, h2 intermediates and pre-sigmoid logits.
    per_row = (2 * pad_k * 2 + 2 * pad_o * 4
               + pad_h1 * (4 + 2) + pad_h2 * (4 + 2) + pad_o * 4)
    budget = 14 * 1024 * 1024          # safe under the 32 MiB scoped limit (v7x: 64 MiB phys)
    tile = max(_LANE, ((budget - fixed) // per_row) // _LANE * _LANE)
    tile = min(tile, 2048)             # up to 2048 packed rows (16384 raw rows at P=8)
    if tile >= rows:
        if rows >= 32:
            # whole batch fits one tile: split into 2 grid steps for v7x megacore
            tile = _round_up(pl.cdiv(rows, 2), 16)
        else:
            tile = rows                # tiny batch: single full-extent block
    return tile


def _block_diag(w, p):
    """Block-diagonal replication: diag(w, w, ..., w) with p blocks."""
    if p == 1:
        return w
    return jnp.kron(jnp.eye(p, dtype=w.dtype), w)


def fraudnet_kernel(x_ref, w1_ref, b1_ref, w2_ref, b2_ref, w3_ref, b3_ref, o_ref):
    # x_ref: (tile_rows, P*input_dim) bf16 — P consecutive batch rows per packed row.
    # Layer 1: Linear(input_dim, 64) + ReLU  (Dropout(0.2) is identity in eval mode).
    h1 = jnp.dot(x_ref[...], w1_ref[...],
                 preferred_element_type=jnp.float32) + b1_ref[...]
    h1 = jnp.maximum(h1, 0.0)
    # Layer 2: Linear(64, 32) + ReLU — bf16 operands, f32 accumulate. Dropout identity.
    h2 = jnp.dot(h1.astype(jnp.bfloat16), w2_ref[...],
                 preferred_element_type=jnp.float32) + b2_ref[...]
    h2 = jnp.maximum(h2, 0.0)
    # Layer 3: Linear(32, 1) + Sigmoid via the block-diagonal (P*32, P) weight:
    # output is a row-major-contiguous (tile_rows, P) slab (element (q, p) is the
    # prediction for original row q*P + p).  b3 comes in as an SMEM scalar.
    logit = jnp.dot(h2.astype(jnp.bfloat16), w3_ref[...],
                    preferred_element_type=jnp.float32) + b3_ref[0, 0]
    o_ref[...] = jax.nn.sigmoid(logit)
    # TODO(synk): training-mode Dropout (stochastic masking via pltpu.prng_random_bits)
    #             not implemented; this reproduces the standard eval-mode forward pass.


def fraudnet_forward(x, params):
    w1, b1, w2, b2, w3, b3 = params
    B, input_dim = x.shape
    h1_dim, h2_dim = w1.shape[1], w2.shape[1]          # 64, 32

    P = _pick_pack_factor(input_dim)
    Bp = _round_up(B, P)                                # tiny pad (< P rows) only
    rows = Bp // P
    tile_rows = _pick_tile_rows(rows, P, input_dim, h1_dim, h2_dim)
    grid = (pl.cdiv(rows, tile_rows),)                  # last block may be partial

    # Pack x: pad to a multiple of P, cast to bf16, and view P consecutive rows as
    # one packed row.  Single fused XLA pass; replaces the old cast + big-pad passes.
    xp = x if Bp == B else jnp.pad(x, ((0, Bp - B), (0, 0)))
    xp = xp.astype(jnp.bfloat16).reshape(rows, P * input_dim)

    # Block-diagonal replicated weights (bf16) and tiled biases (f32) — built once.
    w1bd = _block_diag(w1.astype(jnp.bfloat16), P)      # (P*in,  P*64)
    w2bd = _block_diag(w2.astype(jnp.bfloat16), P)      # (P*64,  P*32)
    w3bd = _block_diag(w3.astype(jnp.bfloat16), P)      # (P*32,  P)
    b1t = jnp.tile(b1, (1, P))                          # (1, P*64)
    b2t = jnp.tile(b2, (1, P))                          # (1, P*32)

    const = lambda i: (0, 0)                            # resident weights: never re-DMA'd
    weight_bytes = (w1bd.size + w2bd.size + w3bd.size) * 2 + (b1t.size + b2t.size + 1) * 4

    out = pl.pallas_call(
        fraudnet_kernel,
        out_shape=jax.ShapeDtypeStruct((rows, P), jnp.float32),
        grid=grid,
        in_specs=[
            pl.BlockSpec((tile_rows, P * input_dim), lambda i: (i, 0)),  # streamed packed x
            pl.BlockSpec((P * input_dim, P * h1_dim), const),            # W1 block-diag (bf16)
            pl.BlockSpec((1, P * h1_dim), const),                        # b1 tiled
            pl.BlockSpec((P * h1_dim, P * h2_dim), const),               # W2 block-diag (bf16)
            pl.BlockSpec((1, P * h2_dim), const),                        # b2 tiled
            pl.BlockSpec((P * h2_dim, P), const),                        # W3 block-diag (bf16)
            pl.BlockSpec(memory_space=pltpu.MemorySpace.SMEM),           # b3 scalar
        ],
        out_specs=pl.BlockSpec((tile_rows, P), lambda i: (i, 0)),
        compiler_params=pltpu.CompilerParams(
            dimension_semantics=("parallel",),
            vmem_limit_bytes=32 * 1024 * 1024,
        ),
        cost_estimate=pl.CostEstimate(
            flops=2 * Bp * (input_dim * h1_dim + h1_dim * h2_dim + h2_dim),
            transcendentals=Bp,
            bytes_accessed=Bp * input_dim * 2 + Bp * 4 + weight_bytes,
        ),
    )(xp, w1bd, b1t, w2bd, b2t, w3bd, b3)

    # (rows, P) is row-major contiguous in the original batch order.
    return out.reshape(Bp, 1)[:B]


def init_params(key, input_dim):
    """Deterministic init mimicking nn.Linear's U(-1/sqrt(fan_in), 1/sqrt(fan_in))."""
    dims = [(input_dim, 64), (64, 32), (32, 1)]
    params = []
    for i, (fan_in, fan_out) in enumerate(dims):
        kw, kb = jax.random.split(jax.random.fold_in(key, i))
        bound = 1.0 / math.sqrt(fan_in)
        w = jax.random.uniform(kw, (fan_in, fan_out), jnp.float32, -bound, bound)
        b = jax.random.uniform(kb, (1, fan_out), jnp.float32, -bound, bound)
        params += [w, b]
    return tuple(params)


def fraudnet_ref(x, params):
    """Pure-JAX reference; mirrors the kernel's bf16 operand quantization exactly."""
    w1, b1, w2, b2, w3, b3 = params
    q = lambda a: a.astype(jnp.bfloat16).astype(jnp.float32)
    h = jnp.maximum(q(x) @ q(w1) + b1, 0.0)
    h = jnp.maximum(q(h) @ q(w2) + b2, 0.0)
    return jax.nn.sigmoid(q(h) @ q(w3) + b3)


if __name__ == "__main__":
    key = jax.random.PRNGKey(0)
    batch, input_dim = 8, 32
    x = jax.random.normal(jax.random.fold_in(key, 100), (batch, input_dim), jnp.float32)
    params = init_params(key, input_dim)

    out = fraudnet_forward(x, params)
    jax.block_until_ready(out)

    ref = fraudnet_ref(x, params)
    assert out.shape == (batch, 1)
    # Tolerance covers bf16 operand quantization (mirrored in the ref) plus
    # MXU accumulation-order differences; outputs are sigmoid-bounded in [0, 1].
    assert jnp.allclose(out, ref, atol=1e-3, rtol=1e-3), "mismatch vs reference"
    print("KERNEL_OK")
</pallas_src>

<mosaic_0001>
module attributes {stable_mosaic.version = 11 : i64} {
  func.func @fraudnet_kernel(%arg0: i32, %arg1: memref<1x256xbf16, #tpu.memory_space<vmem>>, %arg2: memref<256x512xbf16, #tpu.memory_space<vmem>>, %arg3: memref<1x512xf32, #tpu.memory_space<vmem>>, %arg4: memref<512x256xbf16, #tpu.memory_space<vmem>>, %arg5: memref<1x256xf32, #tpu.memory_space<vmem>>, %arg6: memref<256x8xbf16, #tpu.memory_space<vmem>>, %arg7: memref<1x1xf32, #tpu.memory_space<smem>>, %arg8: memref<1x8xf32, #tpu.memory_space<vmem>>) attributes {dimension_semantics = [#tpu.dimension_semantics<parallel>], iteration_bounds = array<i64: 1>, scalar_prefetch = 0 : i64, scratch_operands = 0 : i64, tpu.core_type = #tpu.core_type<tc>, window_params = [{transform_indices = @transform_0, window_bounds = array<i64: 1, 256>}, {pipeline_mode = #tpu.pipeline_mode<synchronous>, transform_indices = @transform_1, window_bounds = array<i64: 256, 512>}, {pipeline_mode = #tpu.pipeline_mode<synchronous>, transform_indices = @transform_2, window_bounds = array<i64: 1, 512>}, {pipeline_mode = #tpu.pipeline_mode<synchronous>, transform_indices = @transform_3, window_bounds = array<i64: 512, 256>}, {pipeline_mode = #tpu.pipeline_mode<synchronous>, transform_indices = @transform_4, window_bounds = array<i64: 1, 256>}, {pipeline_mode = #tpu.pipeline_mode<synchronous>, transform_indices = @transform_5, window_bounds = array<i64: 256, 8>}, {transform_indices = @transform_6, window_bounds = array<i64: 1, 1>}, {transform_indices = @transform_7, window_bounds = array<i64: 1, 8>}]} {
    %c0 = arith.constant 0 : index
    %c0_0 = arith.constant 0 : index
    %0 = vector.load %arg1[%c0, %c0_0] : memref<1x256xbf16, #tpu.memory_space<vmem>>, vector<1x256xbf16>
    %c0_1 = arith.constant 0 : index
    %c0_2 = arith.constant 0 : index
    %1 = vector.load %arg2[%c0_1, %c0_2] : memref<256x512xbf16, #tpu.memory_space<vmem>>, vector<256x512xbf16>
    %cst = arith.constant dense<0.000000e+00> : vector<1x512xf32>
    %2 = tpu.matmul %0, %1, %cst {dimension_numbers = #tpu.dot_dimension_numbers<[1], [0], [0], [1], [0, 0, 1, 1], [], []>} : vector<1x256xbf16>, vector<256x512xbf16>, vector<1x512xf32> -> vector<1x512xf32>
    %c0_3 = arith.constant 0 : index
    %c0_4 = arith.constant 0 : index
    %3 = vector.load %arg3[%c0_3, %c0_4] : memref<1x512xf32, #tpu.memory_space<vmem>>, vector<1x512xf32>
    %4 = arith.addf %2, %3 : vector<1x512xf32>
    %cst_5 = arith.constant 0.000000e+00 : f32
    %5 = vector.broadcast %cst_5 : f32 to vector<1x512xf32>
    %6 = arith.maximumf %4, %5 : vector<1x512xf32>
    %7 = arith.truncf %6 : vector<1x512xf32> to vector<1x512xbf16>
    %c0_6 = arith.constant 0 : index
    %c0_7 = arith.constant 0 : index
    %8 = vector.load %arg4[%c0_6, %c0_7] : memref<512x256xbf16, #tpu.memory_space<vmem>>, vector<512x256xbf16>
    %cst_8 = arith.constant dense<0.000000e+00> : vector<1x256xf32>
    %9 = tpu.matmul %7, %8, %cst_8 {dimension_numbers = #tpu.dot_dimension_numbers<[1], [0], [0], [1], [0, 0, 1, 1], [], []>} : vector<1x512xbf16>, vector<512x256xbf16>, vector<1x256xf32> -> vector<1x256xf32>
    %c0_9 = arith.constant 0 : index
    %c0_10 = arith.constant 0 : index
    %10 = vector.load %arg5[%c0_9, %c0_10] : memref<1x256xf32, #tpu.memory_space<vmem>>, vector<1x256xf32>
    %11 = arith.addf %9, %10 : vector<1x256xf32>
    %cst_11 = arith.constant 0.000000e+00 : f32
    %12 = vector.broadcast %cst_11 : f32 to vector<1x256xf32>
    %13 = arith.maximumf %11, %12 : vector<1x256xf32>
    %14 = arith.truncf %13 : vector<1x256xf32> to vector<1x256xbf16>
    %c0_12 = arith.constant 0 : index
    %c0_13 = arith.constant 0 : index
    %15 = vector.load %arg6[%c0_12, %c0_13] : memref<256x8xbf16, #tpu.memory_space<vmem>>, vector<256x8xbf16>
    %cst_14 = arith.constant dense<0.000000e+00> : vector<1x8xf32>
    %16 = tpu.matmul %14, %15, %cst_14 {dimension_numbers = #tpu.dot_dimension_numbers<[1], [0], [0], [1], [0, 0, 1, 1], [], []>} : vector<1x256xbf16>, vector<256x8xbf16>, vector<1x8xf32> -> vector<1x8xf32>
    %c0_15 = arith.constant 0 : index
    %c0_16 = arith.constant 0 : index
    %17 = memref.load %arg7[%c0_15, %c0_16] : memref<1x1xf32, #tpu.memory_space<smem>>
    %18 = vector.broadcast %17 : f32 to vector<1x8xf32>
    %19 = arith.addf %16, %18 : vector<1x8xf32>
    %20 = arith.negf %19 : vector<1x8xf32>
    %21 = math.exp %20 : vector<1x8xf32>
    %cst_17 = arith.constant 1.000000e+00 : f32
    %22 = vector.broadcast %cst_17 : f32 to vector<1x8xf32>
    %23 = arith.addf %22, %21 : vector<1x8xf32>
    %24 = arith.divf %22, %23 : vector<1x8xf32>
    %c0_18 = arith.constant 0 : index
    %c0_19 = arith.constant 0 : index
    %25 = vector.load %arg8[%c0_18, %c0_19] : memref<1x8xf32, #tpu.memory_space<vmem>>, vector<1x8xf32>
    tpu.vector_store %arg8[%c0_18, %c0_19], %24 {strides = array<i32>} : memref<1x8xf32, #tpu.memory_space<vmem>>, vector<1x8xf32>,
    return
  }
  func.func @transform_0(%arg0: i32) -> (i32, i32) {
    %c0_i32 = arith.constant 0 : i32
    %c0_i32_0 = arith.constant 0 : i32
    return %arg0, %c0_i32 : i32, i32
  }
  func.func @transform_1(%arg0: i32) -> (i32, i32) {
    %c0_i32 = arith.constant 0 : i32
    %c0_i32_0 = arith.constant 0 : i32
    %c0_i32_1 = arith.constant 0 : i32
    return %c0_i32, %c0_i32_0 : i32, i32
  }
  func.func @transform_2(%arg0: i32) -> (i32, i32) {
    %c0_i32 = arith.constant 0 : i32
    %c0_i32_0 = arith.constant 0 : i32
    %c0_i32_1 = arith.constant 0 : i32
    return %c0_i32, %c0_i32_0 : i32, i32
  }
  func.func @transform_3(%arg0: i32) -> (i32, i32) {
    %c0_i32 = arith.constant 0 : i32
    %c0_i32_0 = arith.constant 0 : i32
    %c0_i32_1 = arith.constant 0 : i32
    return %c0_i32, %c0_i32_0 : i32, i32
  }
  func.func @transform_4(%arg0: i32) -> (i32, i32) {
    %c0_i32 = arith.constant 0 : i32
    %c0_i32_0 = arith.constant 0 : i32
    %c0_i32_1 = arith.constant 0 : i32
    return %c0_i32, %c0_i32_0 : i32, i32
  }
  func.func @transform_5(%arg0: i32) -> (i32, i32) {
    %c0_i32 = arith.constant 0 : i32
    %c0_i32_0 = arith.constant 0 : i32
    %c0_i32_1 = arith.constant 0 : i32
    return %c0_i32, %c0_i32_0 : i32, i32
  }
  func.func @transform_6(%arg0: i32) -> (i32, i32) {
    %c0_i32 = arith.constant 0 : i32
    %c0_i32_0 = arith.constant 0 : i32
    %c0_i32_1 = arith.constant 0 : i32
    return %c0_i32, %c0_i32_0 : i32, i32
  }
  func.func @transform_7(%arg0: i32) -> (i32, i32) {
    %c0_i32 = arith.constant 0 : i32
    %c0_i32_0 = arith.constant 0 : i32
    return %arg0, %c0_i32 : i32, i32
  }
}

</mosaic_0001>

<bundles_post_ra>
// kernel: tpu_custom_call.1
= control target key start
LH: loop header
LB: loop body
LE: loop exit
PB: predicated region body
PF: predicated region fallthrough
CT: control target
= control target key end

     0   :  { %13 = vsyncpa [#allocation4], 0  ;;  %s1903_s0 = inlined_call_operand.vmem [shape: bf16[1,256], index: 0, kind: input, shape index: {}]   ;;  %s1904_s1 = inlined_call_operand.hbm [shape: bf16[256,512], index: 1, kind: input, shape index: {}]   ;;  %s1905_s2 = inlined_call_operand.vmem [shape: f32[1,512], index: 2, kind: input, shape index: {}]   ;;  %s1906_s3 = inlined_call_operand.hbm [shape: bf16[512,256], index: 3, kind: input, shape index: {}]   ;;  %s1907_s4 = inlined_call_operand.vmem [shape: f32[1,256], index: 4, kind: input, shape index: {}]   ;;  %s1908_s5 = inlined_call_operand.vmem [shape: bf16[256,8], index: 5, kind: input, shape index: {}]   ;;  %s1909_s6 = inlined_call_operand.<no memory space> [shape: f32[1,1], index: 6, kind: input, shape index: {}]   ;;  %s1910_s7 = inlined_call_operand.hbm [shape: f32[1,8], index: 7, kind: output, shape index: {}]  }
   0x1   :  { %14 = vsyncpa [#allocation7], 0 }
   0x2   :  { %15 = vsyncpa [#allocation5], 0  ;;  %s1721_s24 = smov [#allocation3]   ;;  %s1649_s28 = scalar_lea.hbm %s1904_s1, 8192 }
   0x3   :  { %s23_s25 = sshll.u32 %s1721_s24, 4  ;;  %p1650_p0 = scmp.ne.s32.totalorder %s1904_s1, %s1649_s28  ;;  %s24_s25 = int_to_ptr.vmem [resolvable:$true] %s23_s25 }
   0x4   :  { %p1653_p1 = scmp.lt.u32.totalorder %s1649_s28, %s1904_s1 }
   0x6   :  { %p1655_p2 = pnand %p1653_p1, %p1650_p0 }
   0x8   :  { %1658 = shalt.err (!%p1655_p2)
}
   0x9   :  { %s1659_s10 = scalar_lea.vmem %s24_s25, 8192  ;;  %p1664_p4 = scmp.lt.s32.totalorder %s24_s25, %s24_s25 }
   0xa   :  { %p1660_p3 = scmp.ne.s32.totalorder %s24_s25, %s1659_s10  ;;  %p1665_p5 = scmp.lt.s32.totalorder %s1659_s10, %s1659_s10 }
   0xc   :  { %p1666_p6 = por %p1665_p5, %p1664_p4 }
   0xe   :  { %p1667_p7 = pnand %p1666_p6, %p1660_p3 }
  0x10   :  { %1670 = shalt.err (!%p1667_p7)
}
  0x11   :  { %s1722_s11 = smov 256   ;;  %s1723_s12 = smov 16  }
  0x12   :  { %29 = dma.hbm_to_vmem [thread:$0]  %s1904_s1, 8192, %s24_s25, [#allocation4], %s1722_s11, %s1722_s11, %s1723_s12  }
  0x13   :  { %s1724_s15 = smov [#allocation6]   ;;  %s1671_s19 = scalar_lea.hbm %s1906_s3, 8192 }
  0x14   :  { %s37_s16 = sshll.u32 %s1724_s15, 4  ;;  %p1672_p8 = scmp.ne.s32.totalorder %s1906_s3, %s1671_s19  ;;  %s38_s16 = int_to_ptr.vmem [resolvable:$true] %s37_s16 }
  0x15   :  { %p1675_p9 = scmp.lt.u32.totalorder %s1671_s19, %s1906_s3 }
  0x17   :  { %p1677_p10 = pnand %p1675_p9, %p1672_p8 }
  0x19   :  { %1680 = shalt.err (!%p1677_p10)
}
  0x1a   :  { %s1681_s24 = scalar_lea.vmem %s38_s16, 8192  ;;  %p1686_p12 = scmp.lt.s32.totalorder %s38_s16, %s38_s16 }
  0x1b   :  { %p1682_p11 = scmp.ne.s32.totalorder %s38_s16, %s1681_s24  ;;  %p1687_p13 = scmp.lt.s32.totalorder %s1681_s24, %s1681_s24 }
  0x1d   :  { %p1688_p0 = por %p1687_p13, %p1686_p12 }
  0x1f   :  { %p1689_p1 = pnand %p1688_p0, %p1682_p11 }
  0x21   :  { %1692 = shalt.err (!%p1689_p1)
}
  0x22   :  { %s1725_s1 = smov 128   ;;  %s1726_s25 = smov 8  }
  0x23   :  { %43 = dma.hbm_to_vmem [thread:$0]  %s1906_s3, 8192, %s38_s16, [#allocation7], %s1725_s1, %s1725_s1, %s1726_s25  }
  0x24   :  { %1715 = dma.done.wait [#allocation4], 8192  }
  0x25   :  { %1716 = vsyncadd [#allocation4], 4294959104 }
  0x26   :  { %1717 = dma.done.wait [#allocation7], 8192  }
  0x27   :  { %1718 = vsyncadd [#allocation7], 4294959104  ;;  %v1437_v0 = vld [vmem:[#allocation3 + $0x4] ss:$16 sps:$4 sm:$0xff]   ;;  %v1439_v1 = vld [vmem:[#allocation3] ss:$16 sps:$4 sm:$0xff]   ;;  %v135_v11 = vlaneseq }
  0x28   :  { %489 = vmatprep.subr.bf16.mxu1 %v1437_v0  ;;  %v1440_v2 = vld [vmem:[#allocation3 + $0x24] ss:$16 sps:$4 sm:$0xff]   ;;  %v1442_v3 = vld [vmem:[#allocation3 + $0x20] ss:$16 sps:$4 sm:$0xff]   ;;  %v1727_v9 = vmov 1966171168  }
  0x29   :  { %490 = vmatpush1.bf16.msra.mxu1 %v1439_v1  ;;  %v1443_v4 = vld [vmem:[#allocation3 + $0x44] ss:$16 sps:$4 sm:$0xff]   ;;  %v1445_v5 = vld [vmem:[#allocation3 + $0x40] ss:$16 sps:$4 sm:$0xff]   ;;  %v133_v10 = vunpack.c.l.s4 %v1727_v9  ;;  %v1793_v15 = vshrl.u32 %v135_v11, 7  ;;  %s1728_s14 = smov [#allocation8]  }
  0x2a   :  { %491 = vmatprep.subr.bf16.mxu1 %v1440_v2  ;;  %v1446_v6 = vld [vmem:[#allocation3 + $0x64] ss:$16 sps:$4 sm:$0xff]   ;;  %v1448_v7 = vld [vmem:[#allocation3 + $0x60] ss:$16 sps:$4 sm:$0xff]   ;;  %v1487_v51 = vld [vmem:[#allocation3 + $0xc] ss:$16 sps:$4 sm:$0xff]  }
  0x2b   :  { %v1449_v8 = vld [vmem:[#allocation3 + $0x84] ss:$16 sps:$4 sm:$0xff]   ;;  %v1451_v12 = vld [vmem:[#allocation3 + $0x80] ss:$16 sps:$4 sm:$0xff]   ;;  %v134_v14 = vunpack.c.0.s8 %v133_v10  ;;  %v1485_v53 = vld [vmem:[#allocation3 + $0x8] ss:$16 sps:$4 sm:$0xff]  }
  0x2c   :  { %v1452_v13 = vld [vmem:[#allocation3 + $0xa4] ss:$16 sps:$4 sm:$0xff]   ;;  %v1454_v16 = vld [vmem:[#allocation3 + $0xa0] ss:$16 sps:$4 sm:$0xff]   ;;  %v1490_v55 = vld [vmem:[#allocation3 + $0x2c] ss:$16 sps:$4 sm:$0xff]  }
  0x2d   :  { %492 = vmatpush1.bf16.msra.mxu1 %v1442_v3  ;;  %v1455_v17 = vld [vmem:[#allocation3 + $0xc4] ss:$16 sps:$4 sm:$0xff]   ;;  %v1796_v18 = vsub.s32 %v134_v14, %v1793_v15  ;;  %v1801_v19 = vld.sshfl [vmem:[%s1903_s0] sm:$0x11 pattern:$0x75316420] }
  0x2e   :  { %493 = vmatprep.subr.bf16.mxu1 %v1443_v4  ;;  %v131_v20 = vcombine.high %v1801_v19, %v1801_v19  ;;  %v1457_v21 = vld [vmem:[#allocation3 + $0xc0] ss:$16 sps:$4 sm:$0xff]   ;;  %v1458_v22 = vld [vmem:[#allocation3 + $0xe4] ss:$16 sps:$4 sm:$0xff]   ;;  %v1488_v58 = vld [vmem:[#allocation3 + $0x28] ss:$16 sps:$4 sm:$0xff]  }
  0x2f   :  { %v1460_v24 = vld [vmem:[#allocation3 + $0xe0] ss:$16 sps:$4 sm:$0xff]   ;;  %v1461_v25 = vld [vmem:[#allocation3 + $0x104] ss:$16 sps:$4 sm:$0xff]   ;;  %v1811_v54 = vrot.slane %v1801_v19, %v1796_v18  ;;  %v1493_v59 = vld [vmem:[#allocation3 + $0x4c] ss:$16 sps:$4 sm:$0xff]  }
  0x30   :  { %v1806_v23 = vrot.slane %v131_v20, %v1796_v18  ;;  %v1463_v26 = vld [vmem:[#allocation3 + $0x100] ss:$16 sps:$4 sm:$0xff]   ;;  %v1464_v27 = vld [vmem:[#allocation3 + $0x124] ss:$16 sps:$4 sm:$0xff]   ;;  %v1491_v62 = vld [vmem:[#allocation3 + $0x48] ss:$16 sps:$4 sm:$0xff]  }
  0x31   :  { %494 = vmatpush1.bf16.msra.mxu1 %v1445_v5  ;;  %v1466_v28 = vld [vmem:[#allocation3 + $0x120] ss:$16 sps:$4 sm:$0xff]   ;;  %v1467_v29 = vld [vmem:[#allocation3 + $0x144] ss:$16 sps:$4 sm:$0xff]   ;;  %v1496_v63 = vld [vmem:[#allocation3 + $0x6c] ss:$16 sps:$4 sm:$0xff]  }
  0x32   :  { %495 = vmatprep.subr.bf16.mxu1 %v1446_v6  ;;  %521 = vmatprep.mubr.bf16.mxu1 %v1806_v23  ;;  %v1469_v30 = vld [vmem:[#allocation3 + $0x140] ss:$16 sps:$4 sm:$0xff]   ;;  %v1470_v31 = vld [vmem:[#allocation3 + $0x164] ss:$16 sps:$4 sm:$0xff]   ;;  %v1494_v2 = vld [vmem:[#allocation3 + $0x68] ss:$16 sps:$4 sm:$0xff]  }
  0x33   :  { %v1472_v32 = vld [vmem:[#allocation3 + $0x160] ss:$16 sps:$4 sm:$0xff]   ;;  %v1473_v33 = vld [vmem:[#allocation3 + $0x184] ss:$16 sps:$4 sm:$0xff]   ;;  %v1499_v3 = vld [vmem:[#allocation3 + $0x8c] ss:$16 sps:$4 sm:$0xff]  }
  0x34   :  { %v1533_v34 = vld [vmem:[#allocation6 + $0x4] ss:$8 sps:$4 sm:$0xff]   ;;  %v1535_v35 = vld [vmem:[#allocation6] ss:$8 sps:$4 sm:$0xff]   ;;  %v1536_v36 = vld [vmem:[#allocation6 + $0x14] ss:$8 sps:$4 sm:$0xff]  }
  0x35   :  { %496 = vmatpush1.bf16.msra.mxu1 %v1448_v7  ;;  %v1475_v37 = vld [vmem:[#allocation3 + $0x180] ss:$16 sps:$4 sm:$0xff]   ;;  %975 = vmatprep.subr.bf16.mxu0 %v1533_v34  ;;  %v1476_v39 = vld [vmem:[#allocation3 + $0x1a4] ss:$16 sps:$4 sm:$0xff]   ;;  %v1497_v6 = vld [vmem:[#allocation3 + $0x88] ss:$16 sps:$4 sm:$0xff]  }
  0x36   :  { %497 = vmatprep.subr.bf16.mxu1 %v1449_v8  ;;  %976 = vmatpush1.bf16.msra.mxu0 %v1535_v35  ;;  %v1538_v38 = vld [vmem:[#allocation6 + $0x10] ss:$8 sps:$4 sm:$0xff]   ;;  %v1539_v40 = vld [vmem:[#allocation6 + $0x24] ss:$8 sps:$4 sm:$0xff]   ;;  %v1541_v42 = vld [vmem:[#allocation6 + $0x20] ss:$8 sps:$4 sm:$0xff]  }
  0x37   :  { %977 = vmatprep.subr.bf16.mxu0 %v1536_v36  ;;  %v1478_v41 = vld [vmem:[#allocation3 + $0x1a0] ss:$16 sps:$4 sm:$0xff]   ;;  %v1479_v43 = vld [vmem:[#allocation3 + $0x1c4] ss:$16 sps:$4 sm:$0xff]   ;;  %v1502_v7 = vld [vmem:[#allocation3 + $0xac] ss:$16 sps:$4 sm:$0xff]  }
  0x38   :  { %v1542_v44 = vld [vmem:[#allocation6 + $0x34] ss:$8 sps:$4 sm:$0xff]   ;;  %v1481_v45 = vld [vmem:[#allocation3 + $0x1c0] ss:$16 sps:$4 sm:$0xff]   ;;  %v1545_v48 = vld [vmem:[#allocation6 + $0x44] ss:$8 sps:$4 sm:$0xff]  }
  0x39   :  { %498 = vmatpush1.bf16.msra.mxu1 %v1451_v12  ;;  %v1544_v46 = vld [vmem:[#allocation6 + $0x30] ss:$8 sps:$4 sm:$0xff]   ;;  %v1482_v47 = vld [vmem:[#allocation3 + $0x1e4] ss:$16 sps:$4 sm:$0xff]   ;;  %v1547_v50 = vld [vmem:[#allocation6 + $0x40] ss:$8 sps:$4 sm:$0xff]  }
  0x3a   :  { %499 = vmatprep.subr.bf16.mxu1 %v1452_v13  ;;  %978 = vmatpush1.bf16.msra.mxu0 %v1538_v38  ;;  %v1484_v49 = vld [vmem:[#allocation3 + $0x1e0] ss:$16 sps:$4 sm:$0xff]   ;;  %v1548_v52 = vld [vmem:[#allocation6 + $0x54] ss:$8 sps:$4 sm:$0xff]   ;;  %v1551_v57 = vld [vmem:[#allocation6 + $0x64] ss:$8 sps:$4 sm:$0xff]  }
  0x3b   :  { %979 = vmatprep.subr.bf16.mxu0 %v1539_v40  ;;  %v1550_v56 = vld [vmem:[#allocation6 + $0x50] ss:$8 sps:$4 sm:$0xff]   ;;  %v1553_v60 = vld [vmem:[#allocation6 + $0x60] ss:$8 sps:$4 sm:$0xff]   ;;  %v1554_v61 = vld [vmem:[#allocation6 + $0x74] ss:$8 sps:$4 sm:$0xff]  }
  0x3c   :  { %v1556_v0 = vld [vmem:[#allocation6 + $0x70] ss:$8 sps:$4 sm:$0xff]   ;;  %v1557_v1 = vld [vmem:[#allocation6 + $0x84] ss:$8 sps:$4 sm:$0xff]   ;;  %v1559_v4 = vld [vmem:[#allocation6 + $0x80] ss:$8 sps:$4 sm:$0xff]  }
  0x3d   :  { %500 = vmatpush1.bf16.msra.mxu1 %v1454_v16  ;;  %v1560_v5 = vld [vmem:[#allocation6 + $0x94] ss:$8 sps:$4 sm:$0xff]   ;;  %v1562_v8 = vld [vmem:[#allocation6 + $0x90] ss:$8 sps:$4 sm:$0xff]   ;;  %v1563_v9 = vld [vmem:[#allocation6 + $0xa4] ss:$8 sps:$4 sm:$0xff]  }
  0x3e   :  { %501 = vmatprep.subr.bf16.mxu1 %v1455_v17  ;;  %980 = vmatpush1.bf16.msra.mxu0 %v1541_v42  ;;  %v1500_v10 = vld [vmem:[#allocation3 + $0xa8] ss:$16 sps:$4 sm:$0xff]   ;;  %v1505_v11 = vld [vmem:[#allocation3 + $0xcc] ss:$16 sps:$4 sm:$0xff]   ;;  %s1245_s15 = sshll.u32 %s1728_s14, 4  ;;  %vm1237_vm0 = vcmask 57344   ;;  %s1246_s15 = int_to_ptr.vmem [resolvable:$true] %s1245_s15 }
  0x3f   :  { %981 = vmatprep.subr.bf16.mxu0 %v1542_v44  ;;  %v1565_v12 = vld [vmem:[#allocation6 + $0xa0] ss:$8 sps:$4 sm:$0xff]   ;;  %v1566_v13 = vld [vmem:[#allocation6 + $0xb4] ss:$8 sps:$4 sm:$0xff]   ;;  %v1568_v17 = vld [vmem:[#allocation6 + $0xb0] ss:$8 sps:$4 sm:$0xff]   ;;  %p1698_p3 = scmp.lt.s32.totalorder %s1246_s15, %s1246_s15 }
  0x40   :  { %v1503_v14 = vld [vmem:[#allocation3 + $0xc8] ss:$16 sps:$4 sm:$0xff]   ;;  %v1508_v16 = vld [vmem:[#allocation3 + $0xec] ss:$16 sps:$4 sm:$0xff]   ;;  %v1629_v44 = vld [vmem:[%s1908_s5 + $0x40] sm:$0xff]   ;;  %s1693_s16 = scalar_lea.vmem %s1246_s15, 16 }
  0x41   :  { %502 = vmatpush1.bf16.msra.mxu1 %v1457_v21  ;;  %v1569_v18 = vld [vmem:[#allocation6 + $0xc4] ss:$8 sps:$4 sm:$0xff]   ;;  %v1506_v19 = vld [vmem:[#allocation3 + $0xe8] ss:$16 sps:$4 sm:$0xff]   ;;  %p1694_p2 = scmp.ne.s32.totalorder %s1246_s15, %s1693_s16  ;;  %s1697_s17 = scalar_lea.vmem %s1246_s15, 32 }
  0x42   :  { %503 = vmatprep.subr.bf16.mxu1 %v1458_v22  ;;  %982 = vmatpush1.bf16.msra.mxu0 %v1544_v46  ;;  %v1511_v20 = vld [vmem:[#allocation3 + $0x10c] ss:$16 sps:$4 sm:$0xff]   ;;  %v1571_v21 = vld [vmem:[#allocation6 + $0xc0] ss:$8 sps:$4 sm:$0xff]   ;;  %v1580_v42 = vld [vmem:[#allocation6 + $0xf0] ss:$8 sps:$4 sm:$0xff]   ;;  %p1699_p4 = scmp.lt.s32.totalorder %s1697_s17, %s1693_s16 }
  0x43   :  { %983 = vmatprep.subr.bf16.mxu0 %v1545_v48  ;;  %v1572_v22 = vld [vmem:[#allocation6 + $0xd4] ss:$8 sps:$4 sm:$0xff]   ;;  %v1524_v34 = vld [vmem:[#allocation3 + $0x1a8] ss:$16 sps:$4 sm:$0xff]  }
  0x44   :  { %v1529_v35 = vld [vmem:[#allocation3 + $0x1cc] ss:$16 sps:$4 sm:$0xff]   ;;  %v1527_v36 = vld [vmem:[#allocation3 + $0x1c8] ss:$16 sps:$4 sm:$0xff]   ;;  %v1633_v48 = vld [vmem:[%s1908_s5 + $0x50] sm:$0xff]   ;;  %p1700_p5 = por %p1699_p4, %p1698_p3 }
  0x45   :  { %504 = vmatpush1.bf16.msra.mxu1 %v1460_v24  ;;  %v1514_v24 = vld [vmem:[#allocation3 + $0x12c] ss:$16 sps:$4 sm:$0xff]   ;;  %v1530_v38 = vld [vmem:[#allocation3 + $0x1e8] ss:$16 sps:$4 sm:$0xff]  }
  0x46   :  { %505 = vmatprep.subr.bf16.mxu1 %v1461_v25  ;;  %984 = vmatpush1.bf16.msra.mxu0 %v1547_v50  ;;  %v1574_v25 = vld [vmem:[#allocation6 + $0xd0] ss:$8 sps:$4 sm:$0xff]   ;;  %v1577_v40 = vld [vmem:[#allocation6 + $0xe0] ss:$8 sps:$4 sm:$0xff]   ;;  %p1701_p6 = pnand %p1700_p5, %p1694_p2 }
  0x47   :  { %985 = vmatprep.subr.bf16.mxu0 %v1548_v52  ;;  %v1631_v46 = vld [vmem:[%s1908_s5 + $0x48] sm:$0xff]   ;;  %v1635_v50 = vld [vmem:[%s1908_s5 + $0x58] sm:$0xff]   ;;  %v1637_v52 = vld [vmem:[%s1908_s5 + $0x60] sm:$0xff]  }
  0x49   :  { %506 = vmatpush1.bf16.msra.mxu1 %v1463_v26  ;;  %v1512_v26 = vld [vmem:[#allocation3 + $0x128] ss:$16 sps:$4 sm:$0xff]  }
  0x4a   :  { %507 = vmatprep.subr.bf16.mxu1 %v1464_v27  ;;  %986 = vmatpush1.bf16.msra.mxu0 %v1550_v56  ;;  %v1517_v27 = vld [vmem:[#allocation3 + $0x14c] ss:$16 sps:$4 sm:$0xff]   ;;  %v471_v56 = vsub.s32 0, %v1793_v15 }
  0x4b   :  { %987 = vmatprep.subr.bf16.mxu0 %v1551_v57  ;;  %v1856_v57 = vld [vmem:[%s1905_s2] sm:$0xf] }
  0x4d   :  { %508 = vmatpush1.bf16.msra.mxu1 %v1466_v28  ;;  %v1515_v28 = vld [vmem:[#allocation3 + $0x148] ss:$16 sps:$4 sm:$0xff]  }
  0x4e   :  { %509 = vmatprep.subr.bf16.mxu1 %v1467_v29  ;;  %988 = vmatpush1.bf16.msra.mxu0 %v1553_v60  ;;  %v1520_v29 = vld [vmem:[#allocation3 + $0x16c] ss:$16 sps:$4 sm:$0xff]  }
  0x4f   :  { %989 = vmatprep.subr.bf16.mxu0 %v1554_v61 }
  0x51   :  { %510 = vmatpush1.bf16.msra.mxu1 %v1469_v30  ;;  %v1518_v30 = vld [vmem:[#allocation3 + $0x168] ss:$16 sps:$4 sm:$0xff]  }
  0x52   :  { %511 = vmatprep.subr.bf16.mxu1 %v1470_v31  ;;  %990 = vmatpush1.bf16.msra.mxu0 %v1556_v0  ;;  %v1523_v31 = vld [vmem:[#allocation3 + $0x18c] ss:$16 sps:$4 sm:$0xff]  }
  0x53   :  { %991 = vmatprep.subr.bf16.mxu0 %v1557_v1 }
  0x55   :  { %512 = vmatpush1.bf16.msra.mxu1 %v1472_v32  ;;  %v1521_v32 = vld [vmem:[#allocation3 + $0x188] ss:$16 sps:$4 sm:$0xff]  }
  0x56   :  { %513 = vmatprep.subr.bf16.mxu1 %v1473_v33  ;;  %992 = vmatpush1.bf16.msra.mxu0 %v1559_v4  ;;  %v1526_v33 = vld [vmem:[#allocation3 + $0x1ac] ss:$16 sps:$4 sm:$0xff]  }
  0x57   :  { %993 = vmatprep.subr.bf16.mxu0 %v1560_v5 }
  0x59   :  { %514 = vmatpush1.bf16.msra.mxu1 %v1475_v37  ;;  %v1532_v37 = vld [vmem:[#allocation3 + $0x1ec] ss:$16 sps:$4 sm:$0xff]  }
  0x5a   :  { %515 = vmatprep.subr.bf16.mxu1 %v1476_v39  ;;  %994 = vmatpush1.bf16.msra.mxu0 %v1562_v8  ;;  %v1575_v39 = vld [vmem:[#allocation6 + $0xe4] ss:$8 sps:$4 sm:$0xff]   ;;  %v1586_v8 = vld [vmem:[#allocation6 + $0x114] ss:$8 sps:$4 sm:$0xff]  }
  0x5b   :  { %995 = vmatprep.subr.bf16.mxu0 %v1563_v9  ;;  %v1584_v9 = vld [vmem:[#allocation6 + $0x110] ss:$8 sps:$4 sm:$0xff]  }
  0x5d   :  { %516 = vmatpush1.bf16.msra.mxu1 %v1478_v41  ;;  %v1578_v41 = vld [vmem:[#allocation6 + $0xf4] ss:$8 sps:$4 sm:$0xff]  }
  0x5e   :  { %517 = vmatprep.subr.bf16.mxu1 %v1479_v43  ;;  %996 = vmatpush1.bf16.msra.mxu0 %v1565_v12  ;;  %v1583_v43 = vld [vmem:[#allocation6 + $0x104] ss:$8 sps:$4 sm:$0xff]   ;;  %v1592_v12 = vld [vmem:[#allocation6 + $0x134] ss:$8 sps:$4 sm:$0xff]  }
  0x5f   :  { %997 = vmatprep.subr.bf16.mxu0 %v1566_v13  ;;  %v1590_v13 = vld [vmem:[#allocation6 + $0x130] ss:$8 sps:$4 sm:$0xff]  }
  0x61   :  { %518 = vmatpush1.bf16.msra.mxu1 %v1481_v45  ;;  %v1630_v45 = vld [vmem:[%s1908_s5] sm:$0xff]  }
  0x62   :  { %519 = vmatprep.subr.bf16.mxu1 %v1482_v47  ;;  %998 = vmatpush1.bf16.msra.mxu0 %v1568_v17  ;;  %v1632_v47 = vld [vmem:[%s1908_s5 + $0x8] sm:$0xff]   ;;  %v1598_v17 = vld [vmem:[#allocation6 + $0x154] ss:$8 sps:$4 sm:$0xff]  }
  0x63   :  { %999 = vmatprep.subr.bf16.mxu0 %v1569_v18  ;;  %v1596_v18 = vld [vmem:[#allocation6 + $0x150] ss:$8 sps:$4 sm:$0xff]  }
  0x65   :  { %520 = vmatpush1.bf16.msra.mxu1 %v1484_v49  ;;  %v1634_v49 = vld [vmem:[%s1908_s5 + $0x10] sm:$0xff]  }
  0x66   :  { %530 = vmatprep.subr.bf16.mxu1 %v1487_v51  ;;  %1000 = vmatpush1.bf16.msra.mxu0 %v1571_v21  ;;  %v1636_v51 = vld [vmem:[%s1908_s5 + $0x18] sm:$0xff]  }
  0x67   :  { %1001 = vmatprep.subr.bf16.mxu0 %v1572_v22  ;;  %v1604_v21 = vld [vmem:[#allocation6 + $0x174] ss:$8 sps:$4 sm:$0xff]   ;;  %v1602_v22 = vld [vmem:[#allocation6 + $0x170] ss:$8 sps:$4 sm:$0xff]  }
  0x68   :  { %522 = vmatmul.mubr.bf16.vlgmr.msra.gmra.mrb[0].mxu1 %v1811_v54 }
  0x69   :  { %531 = vmatpush1.bf16.msra.mxu1 %v1485_v53  ;;  %562 = vmatprep.mubr.bf16.mxu1 %v1806_v23  ;;  %v1509_v23 = vld [vmem:[#allocation3 + $0x108] ss:$16 sps:$4 sm:$0xff]   ;;  %v1638_v53 = vld [vmem:[%s1908_s5 + $0x20] sm:$0xff]  }
  0x6a   :  { %532 = vmatprep.subr.bf16.mxu1 %v1490_v55  ;;  %1002 = vmatpush1.bf16.msra.mxu0 %v1574_v25  ;;  %v1640_v55 = vld [vmem:[%s1908_s5 + $0x28] sm:$0xff]   ;;  %v1610_v25 = vld [vmem:[#allocation6 + $0x194] ss:$8 sps:$4 sm:$0xff]  }
  0x6b   :  { %1003 = vmatprep.subr.bf16.mxu0 %v1575_v39 }
  0x6d   :  { %533 = vmatpush1.bf16.msra.mxu1 %v1488_v58  ;;  %v475_v58 = vsub.s32 1, %v1793_v15 }
  0x6e   :  { %534 = vmatprep.subr.bf16.mxu1 %v1493_v59  ;;  %1004 = vmatpush1.bf16.msra.mxu0 %v1577_v40  ;;  %v472_v59 = vrot.slane %v1856_v57, %v471_v56  ;;  %v1623_v40 = vld [vmem:[#allocation6 + $0x1e0] ss:$8 sps:$4 sm:$0xff]  }
  0x6f   :  { %1005 = vmatprep.subr.bf16.mxu0 %v1578_v41  ;;  %v476_v60 = vrot.slane %v1856_v57, %v475_v58  ;;  %v1628_v41 = vld [vmem:[#allocation6 + $0x1f4] ss:$8 sps:$4 sm:$0xff]  }
  0x71   :  { %535 = vmatpush1.bf16.msra.mxu1 %v1491_v62 }
  0x72   :  { %536 = vmatprep.subr.bf16.mxu1 %v1496_v63  ;;  %1006 = vmatpush1.bf16.msra.mxu0 %v1580_v42 }
  0x73   :  { %1016 = vmatprep.subr.bf16.mxu0 %v1583_v43 }
  0x75   :  { %537 = vmatpush1.bf16.msra.mxu1 %v1494_v2 }
  0x76   :  { %538 = vmatprep.subr.bf16.mxu1 %v1499_v3 }
  0x79   :  { %539 = vmatpush1.bf16.msra.mxu1 %v1497_v6 }
  0x7a   :  { %540 = vmatprep.subr.bf16.mxu1 %v1502_v7  ;;  %v1581_v7 = vld [vmem:[#allocation6 + $0x100] ss:$8 sps:$4 sm:$0xff]  }
  0x7d   :  { %541 = vmatpush1.bf16.msra.mxu1 %v1500_v10  ;;  %v1589_v10 = vld [vmem:[#allocation6 + $0x124] ss:$8 sps:$4 sm:$0xff]  }
  0x7e   :  { %542 = vmatprep.subr.bf16.mxu1 %v1505_v11  ;;  %v1587_v11 = vld [vmem:[#allocation6 + $0x120] ss:$8 sps:$4 sm:$0xff]  }
  0x81   :  { %543 = vmatpush1.bf16.msra.mxu1 %v1503_v14  ;;  %v1595_v14 = vld [vmem:[#allocation6 + $0x144] ss:$8 sps:$4 sm:$0xff]  }
  0x82   :  { %544 = vmatprep.subr.bf16.mxu1 %v1508_v16  ;;  %v1593_v16 = vld [vmem:[#allocation6 + $0x140] ss:$8 sps:$4 sm:$0xff]  }
  0x85   :  { %545 = vmatpush1.bf16.msra.mxu1 %v1506_v19  ;;  %v1601_v19 = vld [vmem:[#allocation6 + $0x164] ss:$8 sps:$4 sm:$0xff]  }
  0x86   :  { %546 = vmatprep.subr.bf16.mxu1 %v1511_v20  ;;  %v1599_v20 = vld [vmem:[#allocation6 + $0x160] ss:$8 sps:$4 sm:$0xff]  }
  0x89   :  { %547 = vmatpush1.bf16.msra.mxu1 %v1509_v23  ;;  %v1607_v23 = vld [vmem:[#allocation6 + $0x184] ss:$8 sps:$4 sm:$0xff]  }
  0x8a   :  { %548 = vmatprep.subr.bf16.mxu1 %v1514_v24  ;;  %v1605_v24 = vld [vmem:[#allocation6 + $0x180] ss:$8 sps:$4 sm:$0xff]  }
  0x8d   :  { %549 = vmatpush1.bf16.msra.mxu1 %v1512_v26  ;;  %v1608_v26 = vld [vmem:[#allocation6 + $0x190] ss:$8 sps:$4 sm:$0xff]  }
  0x8e   :  { %550 = vmatprep.subr.bf16.mxu1 %v1517_v27  ;;  %v1613_v27 = vld [vmem:[#allocation6 + $0x1a4] ss:$8 sps:$4 sm:$0xff]  }
  0x91   :  { %551 = vmatpush1.bf16.msra.mxu1 %v1515_v28  ;;  %v1611_v28 = vld [vmem:[#allocation6 + $0x1a0] ss:$8 sps:$4 sm:$0xff]  }
  0x92   :  { %552 = vmatprep.subr.bf16.mxu1 %v1520_v29  ;;  %v1616_v29 = vld [vmem:[#allocation6 + $0x1b4] ss:$8 sps:$4 sm:$0xff]  }
  0x95   :  { %553 = vmatpush1.bf16.msra.mxu1 %v1518_v30  ;;  %v1614_v30 = vld [vmem:[#allocation6 + $0x1b0] ss:$8 sps:$4 sm:$0xff]  }
  0x96   :  { %554 = vmatprep.subr.bf16.mxu1 %v1523_v31  ;;  %v1619_v31 = vld [vmem:[#allocation6 + $0x1c4] ss:$8 sps:$4 sm:$0xff]  }
  0x99   :  { %555 = vmatpush1.bf16.msra.mxu1 %v1521_v32  ;;  %v1617_v32 = vld [vmem:[#allocation6 + $0x1c0] ss:$8 sps:$4 sm:$0xff]  }
  0x9a   :  { %556 = vmatprep.subr.bf16.mxu1 %v1526_v33  ;;  %v1622_v33 = vld [vmem:[#allocation6 + $0x1d4] ss:$8 sps:$4 sm:$0xff]  }
  0x9d   :  { %557 = vmatpush1.bf16.msra.mxu1 %v1524_v34  ;;  %v479_v34 = vsub.s32 2, %v1793_v15 }
  0x9e   :  { %558 = vmatprep.subr.bf16.mxu1 %v1529_v35  ;;  %v1620_v35 = vld [vmem:[#allocation6 + $0x1d0] ss:$8 sps:$4 sm:$0xff]  }
  0xa1   :  { %559 = vmatpush1.bf16.msra.mxu1 %v1527_v36  ;;  %v483_v36 = vsub.s32 3, %v1793_v15 }
  0xa2   :  { %560 = vmatprep.subr.bf16.mxu1 %v1532_v37  ;;  %v1625_v37 = vld [vmem:[#allocation6 + $0x1e4] ss:$8 sps:$4 sm:$0xff]  }
  0xa3   :  { %v484_v39 = vrot.slane %v1856_v57, %v483_v36 }
  0xa5   :  { %561 = vmatpush1.bf16.msra.mxu1 %v1530_v38  ;;  %v480_v38 = vrot.slane %v1856_v57, %v479_v34  ;;  %v1644_v57 = vld [vmem:[%s1908_s5 + $0x38] sm:$0xff]  }
  0xa6   :  { %1401 = vmatprep.subr.bf16.mxu1 %v1629_v44 }
  0xa8   :  { %563 = vmatmul.mubr.bf16.vlgmr.msra.gmra.mrb[4].mxu1 %v1811_v54  ;;  %v1639_v54 = vld [vmem:[%s1908_s5 + $0x68] sm:$0xff]  }
  0xa9   :  { %1402 = vmatpush3.bf16.msra.mxu1 %v1630_v45 }
  0xaa   :  { %1403 = vmatprep.subr.bf16.mxu1 %v1631_v46 }
  0xad   :  { %1404 = vmatpush3.bf16.msra.mxu1 %v1632_v47  ;;  %v1626_v47 = vld [vmem:[#allocation6 + $0x1f0] ss:$8 sps:$4 sm:$0xff]  }
  0xae   :  { %1405 = vmatprep.subr.bf16.mxu1 %v1633_v48 }
  0xb1   :  { %1406 = vmatpush3.bf16.msra.mxu1 %v1634_v49 }
  0xb2   :  { %1407 = vmatprep.subr.bf16.mxu1 %v1635_v50 }
  0xb5   :  { %1408 = vmatpush3.bf16.msra.mxu1 %v1636_v51 }
  0xb6   :  { %1409 = vmatprep.subr.bf16.mxu1 %v1637_v52 }
  0xb9   :  { %1410 = vmatpush3.bf16.msra.mxu1 %v1638_v53  ;;  %v1641_v53 = vld [vmem:[%s1908_s5 + $0x70] sm:$0xff]  }
  0xba   :  { %1411 = vmatprep.subr.bf16.mxu1 %v1639_v54  ;;  %v1642_v54 = vld [vmem:[%s1908_s5 + $0x30] sm:$0xff]  }
  0xbd   :  { %1412 = vmatpush3.bf16.msra.mxu1 %v1640_v55  ;;  %v1643_v55 = vld [vmem:[%s1908_s5 + $0x78] sm:$0xff]  }
  0xbe   :  { %1413 = vmatprep.subr.bf16.mxu1 %v1641_v53 }
  0xc1   :  { %1414 = vmatpush3.bf16.msra.mxu1 %v1642_v54 }
  0xc2   :  { %1415 = vmatprep.subr.bf16.mxu1 %v1643_v55 }
  0xc5   :  { %1416 = vmatpush3.bf16.msra.mxu1 %v1644_v57 }
 0x13b   :  { %v523_v61 = vpop.f32.mrb[0].mxu1 }
 0x13c   :  { %v524_v62 = vadd.f32 %v523_v61, %v472_v59  ;;  %v525_v63 = vpop.f32.mrb[1].mxu1  ;;  %v643_v59 = vld [vmem:[%s1907_s4] sm:$0x3] }
 0x13d   :  { %v526_v0 = vadd.f32 %v525_v63, %v476_v60  ;;  %v527_v1 = vpop.f32.mrb[2].mxu1  ;;  %v968_v60 = vrot.slane %v643_v59, %v471_v56  ;;  %v972_v61 = vrot.slane %v643_v59, %v475_v58  ;;  %v1094_v56 = vstv %s1909_s6 }
 0x13e   :  { %v571_v2 = vmax.f32 %v524_v62, 0.0  ;;  %v528_v3 = vpop.f32.mrb[3].mxu1 }
 0x13f   :  { %v572_v4 = vmax.f32 %v526_v0, 0.0 }
 0x140   :  { %v575_v5 = vpack.c.bf16 %v571_v2, %v571_v2 }
 0x141   :  { %v576_v6 = vpack.c.bf16 %v572_v4, %v572_v4 }
 0x143   :  { %1007 = vmatprep.mubr.bf16.mxu0 %v576_v6 }
 0x144   :  { %1008 = vmatmul.mubr.bf16.vlgmr.msra.gmra.mrb[0].mxu0 %v575_v5 }
 0x145   :  { %1017 = vmatpush1.bf16.msra.mxu0 %v1581_v7 }
 0x146   :  { %1018 = vmatprep.subr.bf16.mxu0 %v1586_v8 }
 0x149   :  { %1019 = vmatpush1.bf16.msra.mxu0 %v1584_v9 }
 0x14a   :  { %1020 = vmatprep.subr.bf16.mxu0 %v1589_v10 }
 0x14d   :  { %1021 = vmatpush1.bf16.msra.mxu0 %v1587_v11 }
 0x14e   :  { %1022 = vmatprep.subr.bf16.mxu0 %v1592_v12 }
 0x151   :  { %1023 = vmatpush1.bf16.msra.mxu0 %v1590_v13 }
 0x152   :  { %1024 = vmatprep.subr.bf16.mxu0 %v1595_v14 }
 0x155   :  { %1025 = vmatpush1.bf16.msra.mxu0 %v1593_v16 }
 0x156   :  { %1026 = vmatprep.subr.bf16.mxu0 %v1598_v17 }
 0x159   :  { %1027 = vmatpush1.bf16.msra.mxu0 %v1596_v18 }
 0x15a   :  { %1028 = vmatprep.subr.bf16.mxu0 %v1601_v19 }
 0x15d   :  { %1029 = vmatpush1.bf16.msra.mxu0 %v1599_v20 }
 0x15e   :  { %1030 = vmatprep.subr.bf16.mxu0 %v1604_v21 }
 0x161   :  { %1031 = vmatpush1.bf16.msra.mxu0 %v1602_v22 }
 0x162   :  { %1032 = vmatprep.subr.bf16.mxu0 %v1607_v23 }
 0x165   :  { %1033 = vmatpush1.bf16.msra.mxu0 %v1605_v24 }
 0x166   :  { %1034 = vmatprep.subr.bf16.mxu0 %v1610_v25 }
 0x169   :  { %1035 = vmatpush1.bf16.msra.mxu0 %v1608_v26 }
 0x16a   :  { %1036 = vmatprep.subr.bf16.mxu0 %v1613_v27 }
 0x16d   :  { %1037 = vmatpush1.bf16.msra.mxu0 %v1611_v28 }
 0x16e   :  { %1038 = vmatprep.subr.bf16.mxu0 %v1616_v29 }
 0x171   :  { %1039 = vmatpush1.bf16.msra.mxu0 %v1614_v30 }
 0x172   :  { %1040 = vmatprep.subr.bf16.mxu0 %v1619_v31 }
 0x175   :  { %1041 = vmatpush1.bf16.msra.mxu0 %v1617_v32 }
 0x176   :  { %1042 = vmatprep.subr.bf16.mxu0 %v1622_v33 }
 0x179   :  { %1043 = vmatpush1.bf16.msra.mxu0 %v1620_v35 }
 0x17a   :  { %1044 = vmatprep.subr.bf16.mxu0 %v1625_v37 }
 0x17b   :  { %v564_v42 = vpop.f32.mrb[4].mxu1 }
 0x17c   :  { %v565_v43 = vadd.f32 %v564_v42, %v480_v38  ;;  %v566_v44 = vpop.f32.mrb[5].mxu1 }
 0x17d   :  { %v567_v45 = vadd.f32 %v566_v44, %v484_v39  ;;  %v568_v46 = vpop.f32.mrb[6].mxu1  ;;  %1045 = vmatpush1.bf16.msra.mxu0 %v1623_v40 }
 0x17e   :  { %v573_v48 = vmax.f32 %v565_v43, 0.0  ;;  %v569_v49 = vpop.f32.mrb[7].mxu1  ;;  %1046 = vmatprep.subr.bf16.mxu0 %v1628_v41 }
 0x17f   :  { %v574_v50 = vmax.f32 %v567_v45, 0.0 }
 0x180   :  { %v577_v52 = vpack.c.bf16 %v573_v48, %v573_v48 }
 0x181   :  { %v578_v51 = vpack.c.bf16 %v574_v50, %v574_v50  ;;  %1047 = vmatpush1.bf16.msra.mxu0 %v1626_v47 }
 0x183   :  { %1048 = vmatprep.mubr.bf16.mxu0 %v578_v51 }
 0x184   :  { %1049 = vmatmul.mubr.bf16.vlgmr.msra.gmra.mrb[0].mxu0 %v577_v52 }
 0x257   :  { %v1050_v62 = vpop.f32.mrb[0].mxu0 }
 0x258   :  { %v1423_v63 = vadd.f32 %v1050_v62, %v968_v60  ;;  %v1052_v0 = vpop.f32.mrb[1].mxu0 }
 0x259   :  { %v1424_v1 = vadd.f32 %v1052_v0, %v972_v61  ;;  %v1054_v2 = vpop.f32.mrb[2].mxu0 }
 0x25a   :  { %v1057_v3 = vmax.f32 %v1423_v63, 0.0  ;;  %v1055_v4 = vpop.f32.mrb[3].mxu0 }
 0x25b   :  { %v1058_v5 = vmax.f32 %v1424_v1, 0.0 }
 0x25c   :  { %v1059_v7 = vpack.c.bf16 %v1057_v3, %v1057_v3 }
 0x25d   :  { %v1060_v6 = vpack.c.bf16 %v1058_v5, %v1058_v5 }
 0x25f   :  { %1223 = vmatprep.mubr.bf16.mxu1 %v1060_v6 }
 0x260   :  { %1224 = vmatmul.mubr.bf16.vlgmr.msra.gmra.mrb[8].mxu1 %v1059_v7 }
 0x333   :  { %v1417_v8 = vpop.f32.mrb[8].mxu1 }
 0x334   :  { %v1418_v9 = vpop.f32.mrb[9].mxu1 }
 0x335   :  { %v1419_v15 = vadd.f32 %v1418_v9, %v1417_v8  ;;  %v1420_v58 = vpop.f32.mrb[10].mxu1 }
 0x336   :  { %v1421_v10 = vpop.f32.mrb[11].mxu1 }
 0x337   :  { %v1226_v11 = vadd.f32 %v1419_v15, %v1094_v56 }
 0x339   :  { %v1400_v12 = vmul.f32 -1.442695, %v1226_v11 }
 0x33b   :  { %1645 = vpow2.f32 %v1400_v12 }
 0x345   :  { %v1646_v13 = vpop.eup %1645 }
 0x346   :  { %v1234_v14 = vadd.f32 1.0, %v1646_v13 }
 0x348   :  { %1647 = vrcp.f32 %v1234_v14 }
 0x352   :  { %v1648_v16 = vpop.eup %1647 }
 0x353   :  { %1238 = vst.msk [vmem:[#allocation8] sm:$0x1] %vm1237_vm0, %v1648_v16 }
 0x354   :  { %1704 = shalt.err (!%p1701_p6)
}
 0x355   :  { %s1705_s19 = scalar_lea.hbm %s1910_s7, 16 }
 0x356   :  { %p1706_p7 = scmp.ne.s32.totalorder %s1910_s7, %s1705_s19  ;;  %p1709_p8 = scmp.lt.u32.totalorder %s1705_s19, %s1910_s7 }
 0x358   :  { %p1711_p9 = pnand %p1709_p8, %p1706_p7 }
 0x35a   :  { %1714 = shalt.err (!%p1711_p9)
}
 0x35b   :  { %1248 = dma.vmem_to_hbm [thread:$0]  %s1246_s15, 16, %s1910_s7, [#allocation5]  }
 0x35c   :  { %1719 = dma.done.wait [#allocation5], 16  }
 0x35d   :  { %1720 = vsyncadd [#allocation5], 4294967280 }
 0x35e   :  { %1252 = vsyncpa [#allocation4], 1 }
 0x35f   :  { %1253 = vsyncpa [#allocation7], 1 }
 0x360   :  { %1254 = vsyncpa [#allocation5], 1 }

</bundles_post_ra>
